<compile_context>
chip_gen: v5e
topology: v5e:2x2
jax: 0.10.0
libtpu: 0.0.40
codegen_flags: <defaults>
</compile_context>

<pallas_src>
import jax
import jax.numpy as jnp
from jax.experimental import pallas as pl
from jax.experimental.pallas import tpu as pltpu


def _round_up(x, m):
    return (x + m - 1) // m * m


def _patch_freq_embed_kernel(x_ref, w_ref, b_ref, o_ref):
    # x_ref: (1, F, tT)    native (batch, freq, time) tile
    # w_ref: (F, E_pad)    weight pre-transposed, VMEM-resident
    # b_ref: (1, E_pad)    bias row, VMEM-resident
    # o_ref: (1, tT, E_pad)
    x = x_ref[0]                                         # (F, tT)
    acc = jax.lax.dot_general(
        x, w_ref[...],
        dimension_numbers=(((0,), (0,)), ((), ())),      # contract F (LHS^T @ RHS)
        preferred_element_type=jnp.float32)              # (tT, E_pad), f32 accumulate
    o_ref[0] = (acc + b_ref[...]).astype(o_ref.dtype)


def patch_frequency_embedding(x, weight, bias, *, time_tile=512):
    """
    x:      (B, F, T)  float32
    weight: (E, F)     float32   (torch nn.Linear.weight layout)
    bias:   (E,)       float32
    returns (B, T, E)  float32
    """
    B, F, T = x.shape
    E = weight.shape[0]

    # Lane-dense tiling: time tile is a multiple of 128 lanes, capped by the
    # (128-rounded) time extent; embedding dim padded to a multiple of 128.
    tT = max(128, min(_round_up(time_tile, 128), _round_up(T, 128)))
    T_pad = _round_up(T, tT)
    E_pad = _round_up(E, 128)

    if T_pad != T:
        x = jnp.pad(x, ((0, 0), (0, 0), (0, T_pad - T)))

    w_t = weight.T                       # (F, E)
    b2d = bias.reshape(1, E)             # (1, E)
    if E_pad != E:
        w_t = jnp.pad(w_t, ((0, 0), (0, E_pad - E)))
        b2d = jnp.pad(b2d, ((0, 0), (0, E_pad - E)))

    grid = (B, T_pad // tT)

    out = pl.pallas_call(
        _patch_freq_embed_kernel,
        out_shape=jax.ShapeDtypeStruct((B, T_pad, E_pad), x.dtype),
        grid_spec=pltpu.PrefetchScalarGridSpec(
            num_scalar_prefetch=0,
            grid=grid,
            in_specs=[
                # Native-layout x tile: (1, F, tT).  F equals the full array
                # dim so the (8,128) divisibility rule is satisfied; tT is a
                # multiple of 128 (lane-dense loads).
                pl.BlockSpec((1, F, tT), lambda b, t: (b, 0, t)),
                # Constant-index blocks -> kept VMEM-resident (no re-DMA).
                pl.BlockSpec((F, E_pad), lambda b, t: (0, 0)),
                pl.BlockSpec((1, E_pad), lambda b, t: (0, 0)),
            ],
            out_specs=pl.BlockSpec((1, tT, E_pad), lambda b, t: (b, t, 0)),
        ),
        compiler_params=pltpu.CompilerParams(
            dimension_semantics=("parallel", "parallel")),
    )(x, w_t, b2d)

    if T_pad != T or E_pad != E:
        out = out[:, :T, :E]
    return out


if __name__ == "__main__":
    key = jax.random.PRNGKey(0)

    def reference(x, w, b):
        # Same math as the PyTorch forward; HIGHEST precision for a clean ref.
        return jnp.einsum("bft,ef->bte", x, w,
                          precision=jax.lax.Precision.HIGHEST) + b

    # Case 1: module defaults (n_freq=101, emb_size=256), aligned T.
    B, F, T, E = 2, 101, 256, 256
    k1, k2, k3, key = jax.random.split(key, 4)
    x = jax.random.normal(k1, (B, F, T), dtype=jnp.float32)
    w = jax.random.normal(k2, (E, F), dtype=jnp.float32) * (1.0 / jnp.sqrt(F))
    b = jax.random.normal(k3, (E,), dtype=jnp.float32) * 0.5
    out = jax.block_until_ready(patch_frequency_embedding(x, w, b))
    ref = reference(x, w, b)
    assert out.shape == (B, T, E), out.shape
    assert jnp.allclose(out, ref, atol=2e-2, rtol=2e-2), \
        float(jnp.max(jnp.abs(out - ref)))

    # Case 2: ragged T (not a multiple of 128) and small E (padded to 128).
    B2, F2, T2, E2 = 2, 101, 200, 96
    k1, k2, k3, key = jax.random.split(key, 4)
    x2 = jax.random.normal(k1, (B2, F2, T2), dtype=jnp.float32)
    w2 = jax.random.normal(k2, (E2, F2), dtype=jnp.float32) * (1.0 / jnp.sqrt(F2))
    b2 = jax.random.normal(k3, (E2,), dtype=jnp.float32) * 0.5
    out2 = jax.block_until_ready(patch_frequency_embedding(x2, w2, b2))
    ref2 = reference(x2, w2, b2)
    assert out2.shape == (B2, T2, E2), out2.shape
    assert jnp.allclose(out2, ref2, atol=2e-2, rtol=2e-2), \
        float(jnp.max(jnp.abs(out2 - ref2)))

    print("KERNEL_OK")
</pallas_src>

<mosaic_0001>
module attributes {stable_mosaic.version = 11 : i64} {
  func.func @_patch_freq_embed_kernel(%arg0: i32, %arg1: i32, %arg2: memref<1x101x256xf32, #tpu.memory_space<vmem>>, %arg3: memref<101x256xf32, #tpu.memory_space<vmem>>, %arg4: memref<1x256xf32, #tpu.memory_space<vmem>>, %arg5: memref<1x256x256xf32, #tpu.memory_space<vmem>>) attributes {dimension_semantics = [#tpu.dimension_semantics<parallel>, #tpu.dimension_semantics<parallel>], iteration_bounds = array<i64: 2, 1>, scalar_prefetch = 0 : i64, scratch_operands = 0 : i64, tpu.core_type = #tpu.core_type<tc>, window_params = [{transform_indices = @transform_0, window_bounds = array<i64: 1, 101, 256>}, {pipeline_mode = #tpu.pipeline_mode<synchronous>, transform_indices = @transform_1, window_bounds = array<i64: 101, 256>}, {pipeline_mode = #tpu.pipeline_mode<synchronous>, transform_indices = @transform_2, window_bounds = array<i64: 1, 256>}, {transform_indices = @transform_3, window_bounds = array<i64: 1, 256, 256>}]} {
    %c0 = arith.constant 0 : index
    %c0_0 = arith.constant 0 : index
    %c0_1 = arith.constant 0 : index
    %0 = vector.load %arg2[%c0, %c0_0, %c0_1] : memref<1x101x256xf32, #tpu.memory_space<vmem>>, vector<1x101x256xf32>
    %1 = vector.shape_cast %0 : vector<1x101x256xf32> to vector<101x256xf32>
    %c0_2 = arith.constant 0 : index
    %c0_3 = arith.constant 0 : index
    %2 = vector.load %arg3[%c0_2, %c0_3] : memref<101x256xf32, #tpu.memory_space<vmem>>, vector<101x256xf32>
    %cst = arith.constant dense<0.000000e+00> : vector<256x256xf32>
    %3 = tpu.matmul %1, %2, %cst {dimension_numbers = #tpu.dot_dimension_numbers<[0], [0], [1], [1], [0, 1, 1, 1], [], []>} : vector<101x256xf32>, vector<101x256xf32>, vector<256x256xf32> -> vector<256x256xf32>
    %c0_4 = arith.constant 0 : index
    %c0_5 = arith.constant 0 : index
    %4 = vector.load %arg4[%c0_4, %c0_5] : memref<1x256xf32, #tpu.memory_space<vmem>>, vector<1x256xf32>
    %5 = vector.broadcast %4 : vector<1x256xf32> to vector<256x256xf32>
    %6 = arith.addf %3, %5 : vector<256x256xf32>
    %c0_6 = arith.constant 0 : index
    %c0_7 = arith.constant 0 : index
    %c0_8 = arith.constant 0 : index
    %7 = vector.load %arg5[%c0_6, %c0_7, %c0_8] : memref<1x256x256xf32, #tpu.memory_space<vmem>>, vector<1x256x256xf32>
    %8 = vector.shape_cast %7 : vector<1x256x256xf32> to vector<256x256xf32>
    %9 = vector.shape_cast %6 : vector<256x256xf32> to vector<1x256x256xf32>
    tpu.vector_store %arg5[%c0_6, %c0_7, %c0_8], %9 {strides = array<i32>} : memref<1x256x256xf32, #tpu.memory_space<vmem>>, vector<1x256x256xf32>,
    return
  }
  func.func @transform_0(%arg0: i32, %arg1: i32) -> (i32, i32, i32) {
    %c0_i32 = arith.constant 0 : i32
    %c0_i32_0 = arith.constant 0 : i32
    return %arg0, %c0_i32, %arg1 : i32, i32, i32
  }
  func.func @transform_1(%arg0: i32, %arg1: i32) -> (i32, i32) {
    %c0_i32 = arith.constant 0 : i32
    %c0_i32_0 = arith.constant 0 : i32
    %c0_i32_1 = arith.constant 0 : i32
    return %c0_i32, %c0_i32_0 : i32, i32
  }
  func.func @transform_2(%arg0: i32, %arg1: i32) -> (i32, i32) {
    %c0_i32 = arith.constant 0 : i32
    %c0_i32_0 = arith.constant 0 : i32
    %c0_i32_1 = arith.constant 0 : i32
    return %c0_i32, %c0_i32_0 : i32, i32
  }
  func.func @transform_3(%arg0: i32, %arg1: i32) -> (i32, i32, i32) {
    %c0_i32 = arith.constant 0 : i32
    %c0_i32_0 = arith.constant 0 : i32
    return %arg0, %arg1, %c0_i32 : i32, i32, i32
  }
}

</mosaic_0001>

<bundles_post_ra>
// kernel: tpu_custom_call.1
= control target key start
LH: loop header
LB: loop body
LE: loop exit
PB: predicated region body
PF: predicated region fallthrough
CT: control target
= control target key end

     0   :  { %8 = vsyncpa [#allocation3], 0  ;;  %s1489_s0 = inlined_call_operand.vmem [shape: f32[2,101,256], index: 0, kind: input, shape index: {}]   ;;  %s1490_s1 = inlined_call_operand.vmem [shape: f32[101,256], index: 1, kind: input, shape index: {}]   ;;  %s1491_s2 = inlined_call_operand.vmem [shape: f32[1,256], index: 2, kind: input, shape index: {}]   ;;  %s1492_s3 = inlined_call_operand.hbm [shape: f32[2,256,256], index: 3, kind: output, shape index: {}]  }
   0x1   :  { %10 = vsyncpa [#allocation3 + $0x1], 0  ;;  %s1080_s12 = smov 0   ;;  %s1082_s13 = smov 0  }
   0x2   :  { %s1084_s14 = smov 0   ;;  %s1086_s15 = smov 0  }
   0x3   :  { %s1088_s16 = smov 0   ;;  %s1090_s17 = smov 0  }
   0x4 LB: > { %s814_s18 = sadd.s32 4294967295, %s1056_s17   ;;  %s815_s19 = sadd.s32 4294967294, %s1056_s17   ;;  %s1056_s17 = sphi %s1090_s17, %s16_s17   ;;  %s1052_s16 = sphi %s1088_s16, %s1499_s16   ;;  %s1048_s15 = sphi %s1086_s15, %s1498_s15   ;;  %s1044_s14 = sphi %s1084_s14, %s1497_s14   ;;  %s1040_s13 = sphi %s1082_s13, %s1496_s13   ;;  %s1036_s12 = sphi %s1080_s12, %s1495_s12  }
   0x5   : > { %s28_s20 = sadd.s32 1, %s1052_s16  ;;  %s107_s21 = sadd.s32 1, %s1044_s14 }
   0x6   : > { %p30_p0 = scmp.ge.s32.totalorder %s28_s20, 2  ;;  %p117_p1 = scmp.ne.s32.totalorder %s1044_s14, %s1040_s13 }
   0x7   : > { %p118_p2 = scmp.eq.s32.totalorder %s814_s18, 1  ;;  %p123_p3 = scmp.ne.s32.totalorder %s1040_s13, %s1036_s12 }
   0x8   : > { %s1501_s20 = smov (%p30_p0, %s28_s20), 0  ;;  %p124_p5 = scmp.eq.s32.totalorder %s815_s19, 1 }
   0x9   : > { %p1120_p4 = por %p118_p2, %p117_p1  ;;  %s102_s23 = ssub.s32 %s1052_s16, %s1501_s20 }
   0xa   : > { %p818_p6 = scmp.ge.s32.totalorder %s1056_s17, 1  ;;  %p105_p7 = scmp.eq.s32.totalorder %s102_s23, 0 }
   0xb   : > { %p1127_p8 = por %p124_p5, %p123_p3  ;;  %p161_p9 = scmp.lt.s32.totalorder %s1056_s17, 3 }
   0xc   : > { %s1133_s25 = scalar_select %p105_p7, %s1044_s14, %s107_s21  }
   0xd   : > { %p162_p10 = pnand %p818_p6, %p161_p9 }
   0xe   : > { %p190_p11 = scmp.lt.s32.totalorder (!%p162_p10), %s1048_s15, 1  ;;  %s892_s18 = sshll.u32 (!%p162_p10), %s1048_s15, 9 }
   0xf   : > { %165 = sbr.rel (%p162_p10) target bundleno = 450 (0x1c2), region = 32  ;;  %s731_s23 = scalar_lea.hbm (!%p162_p10), %s1492_s3, %s892_s18 }
  0x10   : > { %s998_s6 = scalar_lea.hbm (!%p162_p10), %s1492_s3, 1024 }
  0x14   : > { %s191_s26 = scalar_select %p190_p11, %s1048_s15, 1  ;;  %v250_v18 = vld [vmem:[%s1490_s1 + $0xc0] sm:$0x1f]  ;;  %vm419_vm0 = vcmask 1044480   ;;  %v248_v19 = vld [vmem:[%s1490_s1 + $0xb0] sm:$0xff]  ;;  %v249_v21 = vld [vmem:[%s1490_s1 + $0xb8] sm:$0xff] }
  0x15   : > { %893 = vmatpush.msk.msra.mxu2 %vm419_vm0, %v250_v18  ;;  %v251_v20 = vld [vmem:[%s1490_s1 + $0xc8] sm:$0x1f]  ;;  %821 = vmatpush.msk.msra.mxu0 %vm419_vm0, %v250_v18  ;;  %v246_v22 = vld [vmem:[%s1490_s1 + $0xa0] sm:$0xff]  ;;  %v244_v24 = vld [vmem:[%s1490_s1 + $0x90] sm:$0xff]  ;;  %vm322_vm1 = vcmask 826368  }
  0x16   : > { %s919_s27 = smul.u32 208, %s191_s26  ;;  %906 = vmatpush.msk.msra.mxu3 %vm419_vm0, %v251_v20  ;;  %854 = vmatpush.msk.msra.mxu1 %vm419_vm0, %v251_v20  ;;  %v247_v23 = vld [vmem:[%s1490_s1 + $0xa8] sm:$0xff]  ;;  %v245_v27 = vld [vmem:[%s1490_s1 + $0x98] sm:$0xff]  ;;  %v242_v28 = vld [vmem:[%s1490_s1 + $0x80] sm:$0xff]  ;;  %s734_s26 = sshll.u32 %s731_s23, 4  ;;  %s735_s26 = int_to_ptr.hbm [resolvable:$true] %s734_s26 }
  0x17   : > { %894 = vmatpush.msra.mxu2 %v248_v19  ;;  %430 = vmatpush.msra.mxu0 %v248_v19  ;;  %v243_v29 = vld [vmem:[%s1490_s1 + $0x88] sm:$0xff]  ;;  %v240_v30 = vld [vmem:[%s1490_s1 + $0x70] sm:$0xff]  ;;  %v241_v31 = vld [vmem:[%s1490_s1 + $0x78] sm:$0xff]  ;;  %s992_s28 = sshra.s32 %s735_s26, 4  ;;  %s993_s28 = int_to_ptr.hbm [resolvable:$true] %s992_s28 }
  0x18   : > { %s1140_s30 = scalar_lea.vmem %s1489_s0, %s919_s27  ;;  %907 = vmatpush.msra.mxu3 %v249_v21  ;;  %543 = vmatpush.msra.mxu1 %v249_v21  ;;  %v238_v32 = vld [vmem:[%s1490_s1 + $0x60] sm:$0xff]  ;;  %v239_v33 = vld [vmem:[%s1490_s1 + $0x68] sm:$0xff]  ;;  %v236_v34 = vld [vmem:[%s1490_s1 + $0x50] sm:$0xff]  ;;  %s994_s29 = scalar_lea.hbm %s993_s28, 512 }
  0x19   : > { %v201_v0 = vld [vmem:[%s1140_s30 + $0x8] sm:$0xff]  ;;  %v200_v1 = vld [vmem:[%s1140_s30] sm:$0xff]  ;;  %v203_v2 = vld [vmem:[%s1140_s30 + $0x18] sm:$0xff]  ;;  %895 = vmatpush.msra.mxu2 %v246_v22  ;;  %431 = vmatpush.msra.mxu0 %v246_v22  ;;  %p995_p12 = scmp.ne.s32.totalorder %s993_s28, %s994_s29  ;;  %p999_p1 = scmp.lt.s32.totalorder %s993_s28, %s1492_s3 }
  0x1a   : > { %290 = vxpose.xlu0.b32.start [1/13] (short) %v201_v0, 128  ;;  %258 = vxpose.xlu1.b32.start [1/13] (short) %v200_v1, 128  ;;  %v202_v3 = vld [vmem:[%s1140_s30 + $0x10] sm:$0xff]  ;;  %v205_v4 = vld [vmem:[%s1140_s30 + $0x28] sm:$0xff]  ;;  %v204_v5 = vld [vmem:[%s1140_s30 + $0x20] sm:$0xff]  ;;  %p1000_p2 = scmp.lt.s32.totalorder %s998_s6, %s994_s29 }
  0x1b   : > { %v207_v6 = vld [vmem:[%s1140_s30 + $0x38] sm:$0xff]  ;;  %v206_v7 = vld [vmem:[%s1140_s30 + $0x30] sm:$0xff]  ;;  %v209_v8 = vld [vmem:[%s1140_s30 + $0x48] sm:$0xff]  ;;  %908 = vmatpush.msra.mxu3 %v247_v23  ;;  %544 = vmatpush.msra.mxu1 %v247_v23  ;;  %p996_p13 = pnand %p995_p12, %p1120_p4 }
  0x1c   : > { %v208_v9 = vld [vmem:[%s1140_s30 + $0x40] sm:$0xff]  ;;  %v211_v10 = vld [vmem:[%s1140_s30 + $0x58] sm:$0xff]  ;;  %v210_v11 = vld [vmem:[%s1140_s30 + $0x50] sm:$0xff]  ;;  %896 = vmatpush.msra.mxu2 %v244_v24  ;;  %432 = vmatpush.msra.mxu0 %v244_v24  ;;  %p1001_p3 = por %p1000_p2, %p999_p1 }
  0x1d   : > { %v213_v12 = vld [vmem:[%s1140_s30 + $0x68] sm:$0xff]  ;;  %v212_v13 = vld [vmem:[%s1140_s30 + $0x60] sm:$0xff]  ;;  %v215_v14 = vld [vmem:[%s1140_s30 + $0x78] sm:$0xff]  ;;  %909 = vmatpush.msra.mxu3 %v245_v27  ;;  %545 = vmatpush.msra.mxu1 %v245_v27  ;;  %p997_p0 = pneg %p996_p13 }
  0x1e   : > { %v214_v15 = vld [vmem:[%s1140_s30 + $0x70] sm:$0xff]  ;;  %v217_v16 = vld [vmem:[%s1140_s30 + $0x88] sm:$0xff]  ;;  %v216_v17 = vld [vmem:[%s1140_s30 + $0x80] sm:$0xff]  ;;  %897 = vmatpush.msra.mxu2 %v242_v28  ;;  %433 = vmatpush.msra.mxu0 %v242_v28 }
  0x1f   : > { %v219_v25 = vld [vmem:[%s1140_s30 + $0x98] sm:$0xff]  ;;  %v218_v26 = vld [vmem:[%s1140_s30 + $0x90] sm:$0xff]  ;;  %910 = vmatpush.msra.mxu3 %v243_v29  ;;  %546 = vmatpush.msra.mxu1 %v243_v29  ;;  %v221_v35 = vld [vmem:[%s1140_s30 + $0xa8] sm:$0xff]  ;;  %p1002_p5 = pnand %p1001_p3, %p997_p0 }
  0x20   : > { %898 = vmatpush.msra.mxu2 %v240_v30  ;;  %434 = vmatpush.msra.mxu0 %v240_v30  ;;  %v220_v36 = vld [vmem:[%s1140_s30 + $0xa0] sm:$0xff]  ;;  %v237_v37 = vld [vmem:[%s1490_s1 + $0x58] sm:$0xff]  ;;  %v235_v39 = vld [vmem:[%s1490_s1 + $0x48] sm:$0xff] }
  0x21   : > { %911 = vmatpush.msra.mxu3 %v241_v31  ;;  %v234_v38 = vld [vmem:[%s1490_s1 + $0x40] sm:$0xff]  ;;  %547 = vmatpush.msra.mxu1 %v241_v31  ;;  %v232_v40 = vld [vmem:[%s1490_s1 + $0x30] sm:$0xff]  ;;  %v233_v41 = vld [vmem:[%s1490_s1 + $0x38] sm:$0xff] }
  0x22   : > { %291 = vxpose.xlu0.b32.cont [2/13] (short) %v203_v2, 128  ;;  %259 = vxpose.xlu1.b32.cont [2/13] (short) %v202_v3, 128  ;;  %v230_v42 = vld [vmem:[%s1490_s1 + $0x20] sm:$0xff]  ;;  %v231_v43 = vld [vmem:[%s1490_s1 + $0x28] sm:$0xff]  ;;  %v228_v44 = vld [vmem:[%s1490_s1 + $0x10] sm:$0xff] }
  0x23   : > { %899 = vmatpush.msra.mxu2 %v238_v32  ;;  %435 = vmatpush.msra.mxu0 %v238_v32  ;;  %v223_v45 = vld [vmem:[%s1140_s30 + $0xb8] sm:$0xff]  ;;  %v222_v46 = vld [vmem:[%s1140_s30 + $0xb0] sm:$0xff]  ;;  %v226_v48 = vld [vmem:[%s1490_s1] sm:$0xff] }
  0x24   : > { %912 = vmatpush.msra.mxu3 %v239_v33  ;;  %548 = vmatpush.msra.mxu1 %v239_v33  ;;  %v229_v47 = vld [vmem:[%s1490_s1 + $0x18] sm:$0xff]  ;;  %v227_v49 = vld [vmem:[%s1490_s1 + $0x8] sm:$0xff]  ;;  %v224_v51 = vld [vmem:[%s1140_s30 + $0xc0] sm:$0x1f] }
  0x25   : > { %900 = vmatpush.msra.mxu2 %v236_v34  ;;  %436 = vmatpush.msra.mxu0 %v236_v34  ;;  %v225_v50 = vld [vmem:[%s1140_s30 + $0xc8] sm:$0x1f]  ;;  %s186_s30 = sand.u32 1, %s1040_s13   ;;  %v252_v20 = vld [vmem:[%s1491_s2] sm:$0x3] }
  0x26   : > { %913 = vmatpush.msra.mxu3 %v237_v37  ;;  %549 = vmatpush.msra.mxu1 %v237_v37  ;;  %s819_s10 = sshll.u32 %s186_s30, 9  ;;  %v1316_v21 = vperm.slane %v252_v20, 0  ;;  %v1318_v22 = vperm.slane %v252_v20, 1  ;;  %s717_s27 = scalar_lea.sflag [#allocation3], %s186_s30 }
  0x27   : > { %901 = vmatpush.msra.mxu2 %v234_v38  ;;  %437 = vmatpush.msra.mxu0 %v234_v38  ;;  %s1322_s11 = scalar_lea.vmem [#allocation2], %s819_s10 }
  0x28   : > { %914 = vmatpush.msra.mxu3 %v235_v39  ;;  %550 = vmatpush.msra.mxu1 %v235_v39  ;;  %s732_s15 = sshll.u32 %s1322_s11, 4  ;;  %s733_s15 = int_to_ptr.vmem [resolvable:$true] %s732_s15 }
  0x29   : > { %902 = vmatpush.msra.mxu2 %v232_v40  ;;  %438 = vmatpush.msra.mxu0 %v232_v40 }
  0x2a   : > { %292 = vxpose.xlu0.b32.cont [3/13] (short) %v205_v4, 128  ;;  %260 = vxpose.xlu1.b32.cont [3/13] (short) %v204_v5, 128 }
  0x2b   : > { %915 = vmatpush.msra.mxu3 %v233_v41  ;;  %903 = vmatpush.msra.mxu2 %v230_v42 }
  0x2c   : > { %551 = vmatpush.msra.mxu1 %v233_v41  ;;  %439 = vmatpush.msra.mxu0 %v230_v42 }
  0x2d   : > { %916 = vmatpush.msra.mxu3 %v231_v43  ;;  %904 = vmatpush.msra.mxu2 %v228_v44 }
  0x2e   : > { %552 = vmatpush.msra.mxu1 %v231_v43  ;;  %440 = vmatpush.msra.mxu0 %v228_v44 }
  0x2f   : > { %917 = vmatpush.msra.mxu3 %v229_v47  ;;  %905 = vmatpush.msra.mxu2 %v226_v48 }
  0x30   : > { %553 = vmatpush.msra.mxu1 %v229_v47  ;;  %441 = vmatpush.msra.mxu0 %v226_v48 }
  0x31   : > { %918 = vmatpush.msra.mxu3 %v227_v49 }
  0x32   : > { %293 = vxpose.xlu0.b32.cont [4/13] (short) %v207_v6, 128  ;;  %261 = vxpose.xlu1.b32.cont [4/13] (short) %v206_v7, 128 }
  0x33   : > { %554 = vmatpush.msra.mxu1 %v227_v49 }
  0x3a   : > { %294 = vxpose.xlu0.b32.cont [5/13] (short) %v209_v8, 128  ;;  %262 = vxpose.xlu1.b32.cont [5/13] (short) %v208_v9, 128 }
  0x42   : > { %295 = vxpose.xlu0.b32.cont [6/13] (short) %v211_v10, 128  ;;  %263 = vxpose.xlu1.b32.cont [6/13] (short) %v210_v11, 128 }
  0x4a   : > { %296 = vxpose.xlu0.b32.cont [7/13] (short) %v213_v12, 128  ;;  %264 = vxpose.xlu1.b32.cont [7/13] (short) %v212_v13, 128 }
  0x52   : > { %297 = vxpose.xlu0.b32.cont [8/13] (short) %v215_v14, 128  ;;  %265 = vxpose.xlu1.b32.cont [8/13] (short) %v214_v15, 128 }
  0x5a   : > { %298 = vxpose.xlu0.b32.cont [9/13] (short) %v217_v16, 128  ;;  %266 = vxpose.xlu1.b32.cont [9/13] (short) %v216_v17, 128 }
  0x62   : > { %299 = vxpose.xlu0.b32.cont [10/13] (short) %v219_v25, 128  ;;  %267 = vxpose.xlu1.b32.cont [10/13] (short) %v218_v26, 128 }
  0x6a   : > { %300 = vxpose.xlu0.b32.cont [11/13] (short) %v221_v35, 128  ;;  %268 = vxpose.xlu1.b32.cont [11/13] (short) %v220_v36, 128 }
  0x72   : > { %301 = vxpose.xlu0.b32.cont [12/13] (short) %v223_v45, 128  ;;  %269 = vxpose.xlu1.b32.cont [12/13] (short) %v222_v46, 128 }
  0x7a   : > { %302 = vxpose.xlu0.b32.end [13/13] (short) %v225_v50, 128  ;;  %270 = vxpose.xlu1.b32.end [13/13] (short) %v224_v51, 128 }
  0xbe   : > { %v306_v52 = vpop.trf.xlu0  ;;  %v274_v53 = vpop.trf.xlu1 }
  0xbf   : > { %838 = vmatmul.msk.f32.vlgmr.msra.gmra.mxu2 %vm322_vm1, %v306_v52  ;;  %871 = vmatmul.msk.f32.vlgmr.msra.gmra.mxu3 %vm322_vm1, %v306_v52 }
  0xc0   : > { %822 = vmatmul.msk.f32.vlgmr.msra.gmra.mxu0 %vm322_vm1, %v274_v53  ;;  %855 = vmatmul.msk.f32.vlgmr.msra.gmra.mxu1 %vm322_vm1, %v274_v53 }
  0xc6   : > { %v307_v54 = vpop.trf.xlu0  ;;  %v275_v55 = vpop.trf.xlu1 }
  0xc7   : > { %839 = vmatmul.msk.f32.gmra.mxu2 %vm322_vm1, %v307_v54  ;;  %872 = vmatmul.msk.f32.gmra.mxu3 %vm322_vm1, %v307_v54 }
  0xc8   : > { %823 = vmatmul.msk.f32.gmra.mxu0 %vm322_vm1, %v275_v55  ;;  %856 = vmatmul.msk.f32.gmra.mxu1 %vm322_vm1, %v275_v55 }
  0xce   : > { %v308_v56 = vpop.trf.xlu0  ;;  %v276_v57 = vpop.trf.xlu1 }
  0xcf   : > { %840 = vmatmul.msk.f32.gmra.mxu2 %vm322_vm1, %v308_v56  ;;  %873 = vmatmul.msk.f32.gmra.mxu3 %vm322_vm1, %v308_v56 }
  0xd0   : > { %824 = vmatmul.msk.f32.gmra.mxu0 %vm322_vm1, %v276_v57  ;;  %857 = vmatmul.msk.f32.gmra.mxu1 %vm322_vm1, %v276_v57 }
  0xd6   : > { %v309_v58 = vpop.trf.xlu0  ;;  %v277_v59 = vpop.trf.xlu1 }
  0xd7   : > { %841 = vmatmul.msk.f32.gmra.mxu2 %vm322_vm1, %v309_v58  ;;  %874 = vmatmul.msk.f32.gmra.mxu3 %vm322_vm1, %v309_v58 }
  0xd8   : > { %825 = vmatmul.msk.f32.gmra.mxu0 %vm322_vm1, %v277_v59  ;;  %858 = vmatmul.msk.f32.gmra.mxu1 %vm322_vm1, %v277_v59 }
  0xde   : > { %v310_v60 = vpop.trf.xlu0  ;;  %v278_v61 = vpop.trf.xlu1 }
  0xdf   : > { %842 = vmatmul.msk.f32.gmra.mxu2 %vm322_vm1, %v310_v60  ;;  %875 = vmatmul.msk.f32.gmra.mxu3 %vm322_vm1, %v310_v60 }
  0xe0   : > { %826 = vmatmul.msk.f32.gmra.mxu0 %vm322_vm1, %v278_v61  ;;  %859 = vmatmul.msk.f32.gmra.mxu1 %vm322_vm1, %v278_v61 }
  0xe6   : > { %v311_v62 = vpop.trf.xlu0  ;;  %v279_v63 = vpop.trf.xlu1 }
  0xe7   : > { %843 = vmatmul.msk.f32.gmra.mxu2 %vm322_vm1, %v311_v62  ;;  %876 = vmatmul.msk.f32.gmra.mxu3 %vm322_vm1, %v311_v62 }
  0xe8   : > { %827 = vmatmul.msk.f32.gmra.mxu0 %vm322_vm1, %v279_v63  ;;  %860 = vmatmul.msk.f32.gmra.mxu1 %vm322_vm1, %v279_v63 }
  0xee   : > { %v312_v0 = vpop.trf.xlu0  ;;  %v280_v1 = vpop.trf.xlu1 }
  0xef   : > { %844 = vmatmul.msk.f32.gmra.mxu2 %vm322_vm1, %v312_v0  ;;  %877 = vmatmul.msk.f32.gmra.mxu3 %vm322_vm1, %v312_v0 }
  0xf0   : > { %828 = vmatmul.msk.f32.gmra.mxu0 %vm322_vm1, %v280_v1  ;;  %861 = vmatmul.msk.f32.gmra.mxu1 %vm322_vm1, %v280_v1 }
  0xf6   : > { %v313_v2 = vpop.trf.xlu0  ;;  %v281_v3 = vpop.trf.xlu1 }
  0xf7   : > { %845 = vmatmul.msk.f32.gmra.mxu2 %vm322_vm1, %v313_v2  ;;  %878 = vmatmul.msk.f32.gmra.mxu3 %vm322_vm1, %v313_v2 }
  0xf8   : > { %829 = vmatmul.msk.f32.gmra.mxu0 %vm322_vm1, %v281_v3  ;;  %862 = vmatmul.msk.f32.gmra.mxu1 %vm322_vm1, %v281_v3 }
  0xfe   : > { %v314_v4 = vpop.trf.xlu0  ;;  %v282_v5 = vpop.trf.xlu1 }
  0xff   : > { %846 = vmatmul.msk.f32.gmra.mxu2 %vm322_vm1, %v314_v4  ;;  %879 = vmatmul.msk.f32.gmra.mxu3 %vm322_vm1, %v314_v4 }
 0x100   : > { %830 = vmatmul.msk.f32.gmra.mxu0 %vm322_vm1, %v282_v5  ;;  %863 = vmatmul.msk.f32.gmra.mxu1 %vm322_vm1, %v282_v5 }
 0x106   : > { %v315_v6 = vpop.trf.xlu0  ;;  %v283_v7 = vpop.trf.xlu1 }
 0x107   : > { %847 = vmatmul.msk.f32.gmra.mxu2 %vm322_vm1, %v315_v6  ;;  %880 = vmatmul.msk.f32.gmra.mxu3 %vm322_vm1, %v315_v6 }
 0x108   : > { %831 = vmatmul.msk.f32.gmra.mxu0 %vm322_vm1, %v283_v7  ;;  %864 = vmatmul.msk.f32.gmra.mxu1 %vm322_vm1, %v283_v7 }
 0x10e   : > { %v316_v8 = vpop.trf.xlu0  ;;  %v284_v9 = vpop.trf.xlu1 }
 0x10f   : > { %848 = vmatmul.msk.f32.gmra.mxu2 %vm322_vm1, %v316_v8  ;;  %881 = vmatmul.msk.f32.gmra.mxu3 %vm322_vm1, %v316_v8 }
 0x110   : > { %832 = vmatmul.msk.f32.gmra.mxu0 %vm322_vm1, %v284_v9  ;;  %865 = vmatmul.msk.f32.gmra.mxu1 %vm322_vm1, %v284_v9 }
 0x116   : > { %v317_v10 = vpop.trf.xlu0  ;;  %v285_v11 = vpop.trf.xlu1 }
 0x117   : > { %849 = vmatmul.msk.f32.gmra.mxu2 %vm322_vm1, %v317_v10  ;;  %882 = vmatmul.msk.f32.gmra.mxu3 %vm322_vm1, %v317_v10 }
 0x118   : > { %833 = vmatmul.msk.f32.gmra.mxu0 %vm322_vm1, %v285_v11  ;;  %866 = vmatmul.msk.f32.gmra.mxu1 %vm322_vm1, %v285_v11 }
 0x11e   : > { %v318_v12 = vpop.trf.xlu0  ;;  %v286_v13 = vpop.trf.xlu1 }
 0x11f   : > { %850 = vmatmul.msk.f32.gmra.mxu2 %vm322_vm1, %v318_v12  ;;  %883 = vmatmul.msk.f32.gmra.mxu3 %vm322_vm1, %v318_v12 }
 0x120   : > { %834 = vmatmul.msk.f32.gmra.mxu0 %vm322_vm1, %v286_v13  ;;  %867 = vmatmul.msk.f32.gmra.mxu1 %vm322_vm1, %v286_v13 }
 0x126   : > { %v319_v14 = vpop.trf.xlu0  ;;  %v287_v15 = vpop.trf.xlu1 }
 0x127   : > { %851 = vmatmul.msk.f32.gmra.mxu2 %vm322_vm1, %v319_v14  ;;  %884 = vmatmul.msk.f32.gmra.mxu3 %vm322_vm1, %v319_v14 }
 0x128   : > { %835 = vmatmul.msk.f32.gmra.mxu0 %vm322_vm1, %v287_v15  ;;  %868 = vmatmul.msk.f32.gmra.mxu1 %vm322_vm1, %v287_v15 }
 0x12e   : > { %v320_v16 = vpop.trf.xlu0  ;;  %v288_v17 = vpop.trf.xlu1 }
 0x12f   : > { %852 = vmatmul.msk.f32.gmra.mxu2 %vm322_vm1, %v320_v16  ;;  %885 = vmatmul.msk.f32.gmra.mxu3 %vm322_vm1, %v320_v16 }
 0x130   : > { %836 = vmatmul.msk.f32.gmra.mxu0 %vm322_vm1, %v288_v17  ;;  %869 = vmatmul.msk.f32.gmra.mxu1 %vm322_vm1, %v288_v17 }
 0x136   : > { %v321_v18 = vpop.trf.xlu0  ;;  %v289_v19 = vpop.trf.xlu1 }
 0x137   : > { %853 = vmatmul.msk.f32.gmra.mxu2 %vm322_vm1, %v321_v18  ;;  %886 = vmatmul.msk.f32.gmra.mxu3 %vm322_vm1, %v321_v18 }
 0x138   : > { %837 = vmatmul.msk.f32.gmra.mxu0 %vm322_vm1, %v289_v19  ;;  %870 = vmatmul.msk.f32.gmra.mxu1 %vm322_vm1, %v289_v19 }
 0x13d   : > { %v443_v23 = vpop.f32.mrf.mxu0  ;;  %v556_v24 = vpop.f32.mrf.mxu1 }
 0x13e   : > { %v444_v25 = vadd.f32 %v443_v23, %v1316_v21  ;;  %v557_v26 = vadd.f32 %v556_v24, %v1318_v22 }
 0x140   : > { %652 = vst [vmem:[%s1322_s11] sm:$0xff] %v444_v25 }
 0x141   : > { %653 = vst [vmem:[%s1322_s11 + $0x8] sm:$0xff] %v557_v26 }
 0x142   : > { %v491_v27 = vpop.f32.mrf.mxu2  ;;  %v604_v28 = vpop.f32.mrf.mxu3 }
 0x143   : > { %v492_v29 = vadd.f32 %v491_v27, %v1316_v21  ;;  %v605_v30 = vadd.f32 %v604_v28, %v1318_v22 }
 0x145   : > { %684 = vst [vmem:[%s1322_s11 + $0x100] sm:$0xff] %v492_v29  ;;  %v446_v31 = vpop.f32.mrf.mxu0  ;;  %v559_v32 = vpop.f32.mrf.mxu1 }
 0x146   : > { %685 = vst [vmem:[%s1322_s11 + $0x108] sm:$0xff] %v605_v30  ;;  %v447_v33 = vadd.f32 %v446_v31, %v1316_v21  ;;  %v560_v34 = vadd.f32 %v559_v32, %v1318_v22 }
 0x148   : > { %654 = vst [vmem:[%s1322_s11 + $0x10] sm:$0xff] %v447_v33 }
 0x149   : > { %655 = vst [vmem:[%s1322_s11 + $0x18] sm:$0xff] %v560_v34 }
 0x14a   : > { %v494_v35 = vpop.f32.mrf.mxu2  ;;  %v607_v36 = vpop.f32.mrf.mxu3 }
 0x14b   : > { %v495_v37 = vadd.f32 %v494_v35, %v1316_v21  ;;  %v608_v38 = vadd.f32 %v607_v36, %v1318_v22 }
 0x14d   : > { %686 = vst [vmem:[%s1322_s11 + $0x110] sm:$0xff] %v495_v37  ;;  %v449_v39 = vpop.f32.mrf.mxu0  ;;  %v562_v40 = vpop.f32.mrf.mxu1 }
 0x14e   : > { %687 = vst [vmem:[%s1322_s11 + $0x118] sm:$0xff] %v608_v38  ;;  %v450_v41 = vadd.f32 %v449_v39, %v1316_v21  ;;  %v563_v42 = vadd.f32 %v562_v40, %v1318_v22 }
 0x150   : > { %656 = vst [vmem:[%s1322_s11 + $0x20] sm:$0xff] %v450_v41 }
 0x151   : > { %657 = vst [vmem:[%s1322_s11 + $0x28] sm:$0xff] %v563_v42 }
 0x152   : > { %v497_v43 = vpop.f32.mrf.mxu2  ;;  %v610_v44 = vpop.f32.mrf.mxu3 }
 0x153   : > { %v498_v45 = vadd.f32 %v497_v43, %v1316_v21  ;;  %v611_v46 = vadd.f32 %v610_v44, %v1318_v22 }
 0x155   : > { %688 = vst [vmem:[%s1322_s11 + $0x120] sm:$0xff] %v498_v45  ;;  %v452_v47 = vpop.f32.mrf.mxu0  ;;  %v565_v48 = vpop.f32.mrf.mxu1 }
 0x156   : > { %689 = vst [vmem:[%s1322_s11 + $0x128] sm:$0xff] %v611_v46  ;;  %v453_v49 = vadd.f32 %v452_v47, %v1316_v21  ;;  %v566_v50 = vadd.f32 %v565_v48, %v1318_v22 }
 0x158   : > { %658 = vst [vmem:[%s1322_s11 + $0x30] sm:$0xff] %v453_v49 }
 0x159   : > { %659 = vst [vmem:[%s1322_s11 + $0x38] sm:$0xff] %v566_v50 }
 0x15a   : > { %v500_v51 = vpop.f32.mrf.mxu2  ;;  %v613_v52 = vpop.f32.mrf.mxu3 }
 0x15b   : > { %v501_v53 = vadd.f32 %v500_v51, %v1316_v21  ;;  %v614_v54 = vadd.f32 %v613_v52, %v1318_v22 }
 0x15d   : > { %690 = vst [vmem:[%s1322_s11 + $0x130] sm:$0xff] %v501_v53  ;;  %v455_v55 = vpop.f32.mrf.mxu0  ;;  %v568_v56 = vpop.f32.mrf.mxu1 }
 0x15e   : > { %691 = vst [vmem:[%s1322_s11 + $0x138] sm:$0xff] %v614_v54  ;;  %v456_v57 = vadd.f32 %v455_v55, %v1316_v21  ;;  %v569_v58 = vadd.f32 %v568_v56, %v1318_v22 }
 0x160   : > { %660 = vst [vmem:[%s1322_s11 + $0x40] sm:$0xff] %v456_v57 }
 0x161   : > { %661 = vst [vmem:[%s1322_s11 + $0x48] sm:$0xff] %v569_v58 }
 0x162   : > { %v503_v59 = vpop.f32.mrf.mxu2  ;;  %v616_v60 = vpop.f32.mrf.mxu3 }
 0x163   : > { %v504_v61 = vadd.f32 %v503_v59, %v1316_v21  ;;  %v617_v62 = vadd.f32 %v616_v60, %v1318_v22 }
 0x165   : > { %692 = vst [vmem:[%s1322_s11 + $0x140] sm:$0xff] %v504_v61  ;;  %v458_v63 = vpop.f32.mrf.mxu0  ;;  %v571_v0 = vpop.f32.mrf.mxu1 }
 0x166   : > { %693 = vst [vmem:[%s1322_s11 + $0x148] sm:$0xff] %v617_v62  ;;  %v459_v1 = vadd.f32 %v458_v63, %v1316_v21  ;;  %v572_v2 = vadd.f32 %v571_v0, %v1318_v22 }
 0x168   : > { %662 = vst [vmem:[%s1322_s11 + $0x50] sm:$0xff] %v459_v1 }
 0x169   : > { %663 = vst [vmem:[%s1322_s11 + $0x58] sm:$0xff] %v572_v2 }
 0x16a   : > { %v506_v3 = vpop.f32.mrf.mxu2  ;;  %v619_v4 = vpop.f32.mrf.mxu3 }
 0x16b   : > { %v507_v5 = vadd.f32 %v506_v3, %v1316_v21  ;;  %v620_v6 = vadd.f32 %v619_v4, %v1318_v22 }
 0x16d   : > { %694 = vst [vmem:[%s1322_s11 + $0x150] sm:$0xff] %v507_v5  ;;  %v461_v7 = vpop.f32.mrf.mxu0  ;;  %v574_v8 = vpop.f32.mrf.mxu1 }
 0x16e   : > { %695 = vst [vmem:[%s1322_s11 + $0x158] sm:$0xff] %v620_v6  ;;  %v462_v9 = vadd.f32 %v461_v7, %v1316_v21  ;;  %v575_v10 = vadd.f32 %v574_v8, %v1318_v22 }
 0x170   : > { %664 = vst [vmem:[%s1322_s11 + $0x60] sm:$0xff] %v462_v9 }
 0x171   : > { %665 = vst [vmem:[%s1322_s11 + $0x68] sm:$0xff] %v575_v10 }
 0x172   : > { %v509_v11 = vpop.f32.mrf.mxu2  ;;  %v622_v12 = vpop.f32.mrf.mxu3 }
 0x173   : > { %v510_v13 = vadd.f32 %v509_v11, %v1316_v21  ;;  %v623_v14 = vadd.f32 %v622_v12, %v1318_v22 }
 0x175   : > { %696 = vst [vmem:[%s1322_s11 + $0x160] sm:$0xff] %v510_v13  ;;  %v464_v15 = vpop.f32.mrf.mxu0  ;;  %v577_v16 = vpop.f32.mrf.mxu1 }
 0x176   : > { %697 = vst [vmem:[%s1322_s11 + $0x168] sm:$0xff] %v623_v14  ;;  %v465_v17 = vadd.f32 %v464_v15, %v1316_v21  ;;  %v578_v18 = vadd.f32 %v577_v16, %v1318_v22 }
 0x178   : > { %666 = vst [vmem:[%s1322_s11 + $0x70] sm:$0xff] %v465_v17 }
 0x179   : > { %667 = vst [vmem:[%s1322_s11 + $0x78] sm:$0xff] %v578_v18 }
 0x17a   : > { %v512_v19 = vpop.f32.mrf.mxu2  ;;  %v625_v20 = vpop.f32.mrf.mxu3 }
 0x17b   : > { %v513_v23 = vadd.f32 %v512_v19, %v1316_v21  ;;  %v626_v24 = vadd.f32 %v625_v20, %v1318_v22 }
 0x17d   : > { %698 = vst [vmem:[%s1322_s11 + $0x170] sm:$0xff] %v513_v23  ;;  %v467_v25 = vpop.f32.mrf.mxu0  ;;  %v580_v26 = vpop.f32.mrf.mxu1 }
 0x17e   : > { %699 = vst [vmem:[%s1322_s11 + $0x178] sm:$0xff] %v626_v24  ;;  %v468_v27 = vadd.f32 %v467_v25, %v1316_v21  ;;  %v581_v28 = vadd.f32 %v580_v26, %v1318_v22 }
 0x180   : > { %668 = vst [vmem:[%s1322_s11 + $0x80] sm:$0xff] %v468_v27 }
 0x181   : > { %669 = vst [vmem:[%s1322_s11 + $0x88] sm:$0xff] %v581_v28 }
 0x182   : > { %v515_v29 = vpop.f32.mrf.mxu2  ;;  %v628_v30 = vpop.f32.mrf.mxu3 }
 0x183   : > { %v516_v31 = vadd.f32 %v515_v29, %v1316_v21  ;;  %v629_v32 = vadd.f32 %v628_v30, %v1318_v22 }
 0x185   : > { %700 = vst [vmem:[%s1322_s11 + $0x180] sm:$0xff] %v516_v31  ;;  %v470_v33 = vpop.f32.mrf.mxu0  ;;  %v583_v34 = vpop.f32.mrf.mxu1 }
 0x186   : > { %701 = vst [vmem:[%s1322_s11 + $0x188] sm:$0xff] %v629_v32  ;;  %v471_v35 = vadd.f32 %v470_v33, %v1316_v21  ;;  %v584_v36 = vadd.f32 %v583_v34, %v1318_v22 }
 0x188   : > { %670 = vst [vmem:[%s1322_s11 + $0x90] sm:$0xff] %v471_v35 }
 0x189   : > { %671 = vst [vmem:[%s1322_s11 + $0x98] sm:$0xff] %v584_v36 }
 0x18a   : > { %v518_v37 = vpop.f32.mrf.mxu2  ;;  %v631_v38 = vpop.f32.mrf.mxu3 }
 0x18b   : > { %v519_v39 = vadd.f32 %v518_v37, %v1316_v21  ;;  %v632_v40 = vadd.f32 %v631_v38, %v1318_v22 }
 0x18d   : > { %702 = vst [vmem:[%s1322_s11 + $0x190] sm:$0xff] %v519_v39  ;;  %v473_v41 = vpop.f32.mrf.mxu0  ;;  %v586_v42 = vpop.f32.mrf.mxu1 }
 0x18e   : > { %703 = vst [vmem:[%s1322_s11 + $0x198] sm:$0xff] %v632_v40  ;;  %v474_v43 = vadd.f32 %v473_v41, %v1316_v21  ;;  %v587_v44 = vadd.f32 %v586_v42, %v1318_v22 }
 0x190   : > { %672 = vst [vmem:[%s1322_s11 + $0xa0] sm:$0xff] %v474_v43 }
 0x191   : > { %673 = vst [vmem:[%s1322_s11 + $0xa8] sm:$0xff] %v587_v44 }
 0x192   : > { %v521_v45 = vpop.f32.mrf.mxu2  ;;  %v634_v46 = vpop.f32.mrf.mxu3 }
 0x193   : > { %v522_v47 = vadd.f32 %v521_v45, %v1316_v21  ;;  %v635_v48 = vadd.f32 %v634_v46, %v1318_v22 }
 0x195   : > { %704 = vst [vmem:[%s1322_s11 + $0x1a0] sm:$0xff] %v522_v47  ;;  %v476_v49 = vpop.f32.mrf.mxu0  ;;  %v589_v50 = vpop.f32.mrf.mxu1 }
 0x196   : > { %705 = vst [vmem:[%s1322_s11 + $0x1a8] sm:$0xff] %v635_v48  ;;  %v477_v51 = vadd.f32 %v476_v49, %v1316_v21  ;;  %v590_v52 = vadd.f32 %v589_v50, %v1318_v22 }
 0x198   : > { %674 = vst [vmem:[%s1322_s11 + $0xb0] sm:$0xff] %v477_v51 }
 0x199   : > { %675 = vst [vmem:[%s1322_s11 + $0xb8] sm:$0xff] %v590_v52 }
 0x19a   : > { %v524_v53 = vpop.f32.mrf.mxu2  ;;  %v637_v54 = vpop.f32.mrf.mxu3 }
 0x19b   : > { %v525_v55 = vadd.f32 %v524_v53, %v1316_v21  ;;  %v638_v56 = vadd.f32 %v637_v54, %v1318_v22 }
 0x19d   : > { %706 = vst [vmem:[%s1322_s11 + $0x1b0] sm:$0xff] %v525_v55  ;;  %v479_v57 = vpop.f32.mrf.mxu0  ;;  %v592_v58 = vpop.f32.mrf.mxu1 }
 0x19e   : > { %707 = vst [vmem:[%s1322_s11 + $0x1b8] sm:$0xff] %v638_v56  ;;  %v480_v59 = vadd.f32 %v479_v57, %v1316_v21  ;;  %v593_v60 = vadd.f32 %v592_v58, %v1318_v22 }
 0x1a0   : > { %676 = vst [vmem:[%s1322_s11 + $0xc0] sm:$0xff] %v480_v59 }
 0x1a1   : > { %677 = vst [vmem:[%s1322_s11 + $0xc8] sm:$0xff] %v593_v60 }
 0x1a2   : > { %v527_v61 = vpop.f32.mrf.mxu2  ;;  %v640_v62 = vpop.f32.mrf.mxu3 }
 0x1a3   : > { %v528_v63 = vadd.f32 %v527_v61, %v1316_v21  ;;  %v641_v0 = vadd.f32 %v640_v62, %v1318_v22 }
 0x1a5   : > { %708 = vst [vmem:[%s1322_s11 + $0x1c0] sm:$0xff] %v528_v63  ;;  %v482_v1 = vpop.f32.mrf.mxu0  ;;  %v595_v2 = vpop.f32.mrf.mxu1 }
 0x1a6   : > { %709 = vst [vmem:[%s1322_s11 + $0x1c8] sm:$0xff] %v641_v0  ;;  %v483_v3 = vadd.f32 %v482_v1, %v1316_v21  ;;  %v596_v4 = vadd.f32 %v595_v2, %v1318_v22 }
 0x1a8   : > { %678 = vst [vmem:[%s1322_s11 + $0xd0] sm:$0xff] %v483_v3 }
 0x1a9   : > { %679 = vst [vmem:[%s1322_s11 + $0xd8] sm:$0xff] %v596_v4 }
 0x1aa   : > { %v530_v5 = vpop.f32.mrf.mxu2  ;;  %v643_v6 = vpop.f32.mrf.mxu3 }
 0x1ab   : > { %v531_v7 = vadd.f32 %v530_v5, %v1316_v21  ;;  %v644_v8 = vadd.f32 %v643_v6, %v1318_v22 }
 0x1ad   : > { %710 = vst [vmem:[%s1322_s11 + $0x1d0] sm:$0xff] %v531_v7  ;;  %v485_v9 = vpop.f32.mrf.mxu0  ;;  %v598_v10 = vpop.f32.mrf.mxu1 }
 0x1ae   : > { %711 = vst [vmem:[%s1322_s11 + $0x1d8] sm:$0xff] %v644_v8  ;;  %v486_v11 = vadd.f32 %v485_v9, %v1316_v21  ;;  %v599_v12 = vadd.f32 %v598_v10, %v1318_v22 }
 0x1b0   : > { %680 = vst [vmem:[%s1322_s11 + $0xe0] sm:$0xff] %v486_v11 }
 0x1b1   : > { %681 = vst [vmem:[%s1322_s11 + $0xe8] sm:$0xff] %v599_v12 }
 0x1b2   : > { %v533_v13 = vpop.f32.mrf.mxu2  ;;  %v646_v14 = vpop.f32.mrf.mxu3 }
 0x1b3   : > { %v534_v15 = vadd.f32 %v533_v13, %v1316_v21  ;;  %v647_v16 = vadd.f32 %v646_v14, %v1318_v22 }
 0x1b5   : > { %712 = vst [vmem:[%s1322_s11 + $0x1e0] sm:$0xff] %v534_v15  ;;  %v488_v17 = vpop.f32.mrf.mxu0  ;;  %v601_v18 = vpop.f32.mrf.mxu1 }
 0x1b6   : > { %713 = vst [vmem:[%s1322_s11 + $0x1e8] sm:$0xff] %v647_v16  ;;  %v489_v19 = vadd.f32 %v488_v17, %v1316_v21  ;;  %v602_v20 = vadd.f32 %v601_v18, %v1318_v22 }
 0x1b8   : > { %682 = vst [vmem:[%s1322_s11 + $0xf0] sm:$0xff] %v489_v19 }
 0x1b9   : > { %683 = vst [vmem:[%s1322_s11 + $0xf8] sm:$0xff] %v602_v20 }
 0x1ba   : > { %v536_v23 = vpop.f32.mrf.mxu2  ;;  %v649_v24 = vpop.f32.mrf.mxu3 }
 0x1bb   : > { %v537_v25 = vadd.f32 %v536_v23, %v1316_v21  ;;  %v650_v26 = vadd.f32 %v649_v24, %v1318_v22 }
 0x1bd   : > { %714 = vst [vmem:[%s1322_s11 + $0x1f0] sm:$0xff] %v537_v25 }
 0x1be   : > { %715 = vst [vmem:[%s1322_s11 + $0x1f8] sm:$0xff] %v650_v26 }
 0x1bf   : > { %1005 = shalt.err (!%p1002_p5)
}
 0x1c0   : > { %s1058_s30 = smov 256   ;;  %s1059_s9 = smov 16  }
 0x1c1   : > { %920 = dma.vmem_to_hbm [thread:$0]  (%p1120_p4), %s733_s15, 8192, %s735_s26, %s717_s27, %s1058_s30, %s1058_s30, %s1059_s9  }
 0x1c2 PF: > { %p926_p6 = scmp.ge.s32.totalorder %s1056_s17, 2  ;;  %s749_s10 = sand.u32 1, %s1036_s12  }
 0x1c3   : > { %s750_s11 = scalar_lea.sflag [#allocation3], %s749_s10 }
 0x1c4   : > { %p923_p7 = pnand %p926_p6, %p1127_p8 }
 0x1c6   : > { %p924_p9 = pneg %p923_p7 }
 0x1c8   : > { %1031 = dma.done.wait (%p924_p9), %s750_s11, 8192  }
 0x1c9   : > { %1033 = vsyncadd (%p924_p9), %s750_s11, 4294959104  ;;  %s16_s17 = sadd.s32 1, %s1056_s17   ;;  %s1495_s12 = smov %s1040_s13 }
 0x1ca   : > { %p13_p10 = scmp.ge.s32.totalorder %s16_s17, 4   ;;  %s1496_s13 = smov %s1044_s14 }
 0x1cb   : > { %s1497_s14 = smov %s1133_s25  ;;  %s1498_s15 = smov %s1052_s16 }
 0x1cc   : > { %s1499_s16 = smov %s1501_s20  ;;  %15 = sbr.rel (!%p13_p10) target bundleno = 4 (0x4), region = 67 }
 0x1d1   :  { %756 = vsyncpa [#allocation3], 1 }
 0x1d2   :  { %758 = vsyncpa [#allocation3 + $0x1], 1 }

</bundles_post_ra>
